<compile_context>
chip_gen: v7x
topology: tpu7x:2x2x1
jax: 0.10.0
libtpu: 0.0.40
codegen_flags: <defaults>
</compile_context>

<pallas_src>
import functools

import jax
import jax.numpy as jnp
from jax.experimental import pallas as pl
from jax.experimental.pallas import tpu as pltpu


def conv1x1_pad_kernel(x_ref, w_ref, b_ref, o_ref):
    # x_ref: VMEM (N, C, H, W) unpadded activations
    # w_ref: SMEM (C,) weights      b_ref: SMEM (1,) bias
    # o_ref: VMEM (N, Hp, Wp) padded conv output (single output channel, squeezed)
    n, c_in, h, w = x_ref.shape
    _, hp, wp = o_ref.shape
    pad = (hp - h) // 2

    # Hoisted SMEM scalar reads.
    bias = b_ref[0]
    wk = [w_ref[c] for c in range(c_in)]

    # Border: zero-padded input * weights == 0, so the whole frame starts at bias.
    o_ref[...] = jnp.full(o_ref.shape, bias, dtype=o_ref.dtype)

    # Interior: weighted channel sum on the VPU, balanced add tree, both batch
    # images in one slab -> a single sub-window store at static offsets.
    terms = [x_ref[:, c] * wk[c] for c in range(c_in)]          # each (N, H, W)
    while len(terms) > 1:
        terms = [terms[i] + terms[i + 1] if i + 1 < len(terms) else terms[i]
                 for i in range(0, len(terms), 2)]
    o_ref[:, pl.ds(pad, h), pl.ds(pad, w)] = terms[0] + bias
    # NOTE: the reference module computes v2 = tanh(v1) but returns v1; the
    # tanh is dead code and intentionally not emitted.


def model_forward(x, weight, bias, *, padding=6):
    """Conv2d(C_in, 1, kernel_size=1, stride=1, padding=padding); returns v1."""
    n, c_in, h, w = x.shape
    c_out = weight.shape[0]
    assert c_out == 1, "kernel assumes Conv2d(..., 1, 1): a single output channel"
    hp, wp = h + 2 * padding, w + 2 * padding

    w_flat = weight.reshape(c_in).astype(jnp.float32)   # (C,)  -- free reshape
    b_flat = bias.reshape(c_out).astype(jnp.float32)    # (1,)

    in_bytes = n * c_in * h * w * 4
    out_bytes = n * hp * wp * 4
    out = pl.pallas_call(
        conv1x1_pad_kernel,
        out_shape=jax.ShapeDtypeStruct((n, hp, wp), jnp.float32),
        in_specs=[
            pl.BlockSpec(memory_space=pltpu.MemorySpace.VMEM),   # activations
            pl.BlockSpec(memory_space=pltpu.MemorySpace.SMEM),   # weights (4 scalars)
            pl.BlockSpec(memory_space=pltpu.MemorySpace.SMEM),   # bias (1 scalar)
        ],
        out_specs=pl.BlockSpec(memory_space=pltpu.MemorySpace.VMEM),
        cost_estimate=pl.CostEstimate(
            flops=2 * n * c_in * h * w,
            transcendentals=0,
            bytes_accessed=in_bytes + out_bytes + (c_in + 1) * 4,
        ),
    )(x.astype(jnp.float32), w_flat, b_flat)

    return out.reshape(n, c_out, hp, wp)                # free reshape


if __name__ == "__main__":
    key = jax.random.PRNGKey(0)
    k_x, k_w, k_b = jax.random.split(key, 3)

    N, C_in, H, W = 2, 4, 16, 16
    C_out, padding = 1, 6

    x = jax.random.normal(k_x, (N, C_in, H, W), dtype=jnp.float32)
    # Conv2d(4, 1, 1) parameters: weight (O, C, 1, 1) and bias (O,)
    fan_in = C_in * 1 * 1
    bound = 1.0 / (fan_in ** 0.5)
    wgt = jax.random.uniform(k_w, (C_out, C_in, 1, 1),
                             minval=-bound, maxval=bound, dtype=jnp.float32)
    b = jax.random.uniform(k_b, (C_out,),
                           minval=-bound, maxval=bound, dtype=jnp.float32)

    fwd = jax.jit(functools.partial(model_forward, padding=padding))
    out = jax.block_until_ready(fwd(x, wgt, b))

    # Reference: 1x1 conv == channel contraction + bias; padded border == bias.
    Hp, Wp = H + 2 * padding, W + 2 * padding
    ref_interior = jnp.einsum("nchw,oc->nohw", x, wgt.reshape(C_out, C_in)) \
        + b.reshape(1, C_out, 1, 1)
    ref = jnp.full((N, C_out, Hp, Wp), b[0], dtype=jnp.float32)
    ref = jax.lax.dynamic_update_slice(ref, ref_interior, (0, 0, padding, padding))

    assert out.shape == (N, C_out, Hp, Wp)
    assert jnp.allclose(out, ref, atol=1e-5, rtol=1e-5)
    print("KERNEL_OK")
</pallas_src>

<mosaic_0001>
module attributes {stable_mosaic.version = 11 : i64} {
  func.func @conv1x1_pad_kernel(%arg0: memref<2x4x16x16xf32, #tpu.memory_space<vmem>>, %arg1: memref<4xf32, #tpu.memory_space<smem>>, %arg2: memref<1xf32, #tpu.memory_space<smem>>, %arg3: memref<2x28x28xf32, #tpu.memory_space<vmem>>) attributes {dimension_semantics = [], scalar_prefetch = 0 : i64, scratch_operands = 0 : i64, tpu.core_type = #tpu.core_type<tc>} {
    %c0 = arith.constant 0 : index
    %0 = memref.load %arg2[%c0] : memref<1xf32, #tpu.memory_space<smem>>
    %c0_0 = arith.constant 0 : index
    %1 = memref.load %arg1[%c0_0] : memref<4xf32, #tpu.memory_space<smem>>
    %c1 = arith.constant 1 : index
    %2 = memref.load %arg1[%c1] : memref<4xf32, #tpu.memory_space<smem>>
    %c2 = arith.constant 2 : index
    %3 = memref.load %arg1[%c2] : memref<4xf32, #tpu.memory_space<smem>>
    %c3 = arith.constant 3 : index
    %4 = memref.load %arg1[%c3] : memref<4xf32, #tpu.memory_space<smem>>
    %5 = vector.broadcast %0 : f32 to vector<2x28x28xf32>
    %c0_1 = arith.constant 0 : index
    %c0_2 = arith.constant 0 : index
    %c0_3 = arith.constant 0 : index
    %6 = vector.load %arg3[%c0_1, %c0_2, %c0_3] : memref<2x28x28xf32, #tpu.memory_space<vmem>>, vector<2x28x28xf32>
    tpu.vector_store %arg3[%c0_1, %c0_2, %c0_3], %5 {strides = array<i32>} : memref<2x28x28xf32, #tpu.memory_space<vmem>>, vector<2x28x28xf32>,
    %c0_4 = arith.constant 0 : index
    %c0_5 = arith.constant 0 : index
    %c0_6 = arith.constant 0 : index
    %c0_7 = arith.constant 0 : index
    %7 = vector.load %arg0[%c0_4, %c0_5, %c0_6, %c0_7] : memref<2x4x16x16xf32, #tpu.memory_space<vmem>>, vector<2x1x16x16xf32>
    %8 = vector.shape_cast %7 : vector<2x1x16x16xf32> to vector<2x16x16xf32>
    %9 = vector.broadcast %1 : f32 to vector<2x16x16xf32>
    %10 = arith.mulf %8, %9 : vector<2x16x16xf32>
    %c0_8 = arith.constant 0 : index
    %c1_9 = arith.constant 1 : index
    %c0_10 = arith.constant 0 : index
    %c0_11 = arith.constant 0 : index
    %11 = vector.load %arg0[%c0_8, %c1_9, %c0_10, %c0_11] : memref<2x4x16x16xf32, #tpu.memory_space<vmem>>, vector<2x1x16x16xf32>
    %12 = vector.shape_cast %11 : vector<2x1x16x16xf32> to vector<2x16x16xf32>
    %13 = vector.broadcast %2 : f32 to vector<2x16x16xf32>
    %14 = arith.mulf %12, %13 : vector<2x16x16xf32>
    %c0_12 = arith.constant 0 : index
    %c2_13 = arith.constant 2 : index
    %c0_14 = arith.constant 0 : index
    %c0_15 = arith.constant 0 : index
    %15 = vector.load %arg0[%c0_12, %c2_13, %c0_14, %c0_15] : memref<2x4x16x16xf32, #tpu.memory_space<vmem>>, vector<2x1x16x16xf32>
    %16 = vector.shape_cast %15 : vector<2x1x16x16xf32> to vector<2x16x16xf32>
    %17 = vector.broadcast %3 : f32 to vector<2x16x16xf32>
    %18 = arith.mulf %16, %17 : vector<2x16x16xf32>
    %c0_16 = arith.constant 0 : index
    %c3_17 = arith.constant 3 : index
    %c0_18 = arith.constant 0 : index
    %c0_19 = arith.constant 0 : index
    %19 = vector.load %arg0[%c0_16, %c3_17, %c0_18, %c0_19] : memref<2x4x16x16xf32, #tpu.memory_space<vmem>>, vector<2x1x16x16xf32>
    %20 = vector.shape_cast %19 : vector<2x1x16x16xf32> to vector<2x16x16xf32>
    %21 = vector.broadcast %4 : f32 to vector<2x16x16xf32>
    %22 = arith.mulf %20, %21 : vector<2x16x16xf32>
    %23 = arith.addf %10, %14 : vector<2x16x16xf32>
    %24 = arith.addf %18, %22 : vector<2x16x16xf32>
    %25 = arith.addf %23, %24 : vector<2x16x16xf32>
    %26 = vector.broadcast %0 : f32 to vector<2x16x16xf32>
    %27 = arith.addf %25, %26 : vector<2x16x16xf32>
    %c0_20 = arith.constant 0 : index
    %c6 = arith.constant 6 : index
    %c6_21 = arith.constant 6 : index
    %28 = vector.load %arg3[%c0_20, %c6, %c6_21] : memref<2x28x28xf32, #tpu.memory_space<vmem>>, vector<2x16x16xf32>
    tpu.vector_store %arg3[%c0_20, %c6, %c6_21], %27 {strides = array<i32>} : memref<2x28x28xf32, #tpu.memory_space<vmem>>, vector<2x16x16xf32>,
    return
  }
}

</mosaic_0001>

<bundles_post_ra>
// kernel: model_forward.1
= control target key start
LH: loop header
LB: loop body
LE: loop exit
PB: predicated region body
PF: predicated region fallthrough
CT: control target
= control target key end

     0   :  { %9 = vsyncpa [#allocation4], 0  ;;  %s279_s0 = inlined_call_operand.hbm [shape: f32[2,4,16,16], index: 0, kind: input, shape index: {}]   ;;  %s280_s1 = inlined_call_operand.vmem [shape: f32[4], index: 1, kind: input, shape index: {}]   ;;  %s281_s2 = inlined_call_operand.<no memory space> [shape: f32[1], index: 2, kind: input, shape index: {}]   ;;  %s282_s3 = inlined_call_operand.vmem [shape: f32[2,28,28], index: 3, kind: output, shape index: {}]  }
   0x1   :  { %10 = vsyncpa [#allocation5], 0  ;;  %s186_s12 = smov [#allocation3]   ;;  %s29_s16 = sshll.u32 %s280_s1, 4  ;;  %s30_s16 = int_to_ptr.vmem [resolvable:$true] %s29_s16 }
   0x2   :  { %s16_s13 = sshll.u32 %s186_s12, 4  ;;  %s148_s19 = scalar_lea.hbm %s279_s0, 2048  ;;  %s17_s13 = int_to_ptr.vmem [resolvable:$true] %s16_s13 }
   0x3   :  { %p149_p0 = scmp.ne.s32.totalorder %s279_s0, %s148_s19  ;;  %p152_p1 = scmp.lt.u32.totalorder %s148_s19, %s279_s0 }
   0x5   :  { %p154_p2 = pnand %p152_p1, %p149_p0 }
   0x7   :  { %157 = shalt.err (!%p154_p2)
}
   0x8   :  { %s158_s24 = scalar_lea.vmem %s17_s13, 2048  ;;  %p163_p4 = scmp.lt.s32.totalorder %s17_s13, %s17_s13 }
   0x9   :  { %p159_p3 = scmp.ne.s32.totalorder %s17_s13, %s158_s24  ;;  %p164_p5 = scmp.lt.s32.totalorder %s158_s24, %s158_s24 }
   0xb   :  { %p165_p6 = por %p164_p5, %p163_p4 }
   0xd   :  { %p166_p7 = pnand %p165_p6, %p159_p3 }
   0xf   :  { %169 = shalt.err (!%p166_p7)
}
  0x10   :  { %s187_s1 = smov 128   ;;  %s188_s25 = smov 8  }
  0x11   :  { %22 = dma.hbm_to_vmem [thread:$0]  %s279_s0, 2048, %s17_s13, [#allocation4], %s187_s1, %s187_s1, %s188_s25  }
  0x12   :  { %s170_s28 = scalar_lea.vmem %s30_s16, 16  ;;  %p175_p9 = scmp.lt.s32.totalorder %s30_s16, %s30_s16 }
  0x13   :  { %p171_p8 = scmp.ne.s32.totalorder %s30_s16, %s170_s28  ;;  %p176_p10 = scmp.lt.s32.totalorder %s170_s28, %s170_s28 }
  0x15   :  { %p177_p11 = por %p176_p10, %p175_p9 }
  0x17   :  { %p178_p12 = pnand %p177_p11, %p171_p8 }
  0x19   :  { %181 = shalt.err (!%p178_p12)
}
  0x1a   :  { %s189_s29 = smov [#allocation6]  }
  0x1b   :  { %32 = dma.vmem_to_smem %s30_s16, 16, %s189_s29, [#allocation5]  }
  0x1c   :  { %182 = dma.done.wait [#allocation4], 2048  }
  0x1d   :  { %183 = vsyncadd [#allocation4], 4294965248 }
  0x1e   :  { %184 = dma.done.wait [#allocation5], 16  }
  0x1f   :  { %185 = vsyncadd [#allocation5], 4294967280 }
  0x20   :  { %41 = sfence }
  0x21   :  { %s43_s30 = sld [smem:[#allocation6]]  ;;  %s140_s4 = sld [smem:[#allocation6 + $0x1]]  ;;  %v229_v0 = vstv %s281_s2  ;;  %vm52_vm0 = vcmask 224256   ;;  %vm48_vm1 = vcmask 228352   ;;  %v60_v1 = vld [vmem:[#allocation3 + $0x40] sm:$0xff]  ;;  %v70_v2 = vld [vmem:[#allocation3 + $0x50] sm:$0xff] }
  0x22   :  { %s141_s0 = sld [smem:[#allocation6 + $0x2]]  ;;  %s142_s7 = sld [smem:[#allocation6 + $0x3]]  ;;  %53 = vst.msk [vmem:[%s282_s3 + $0x18] sm:$0xf] %vm52_vm0, %v229_v0  ;;  %57 = vst.msk [vmem:[%s282_s3 + $0x38] sm:$0xf] %vm52_vm0, %v229_v0 }
  0x23   :  { %54 = vst.msk [vmem:[%s282_s3 + $0x20] sm:$0xff] %vm48_vm1, %v229_v0  ;;  %55 = vst.msk [vmem:[%s282_s3 + $0x28] sm:$0xff] %vm48_vm1, %v229_v0  ;;  %v80_v3 = vld [vmem:[#allocation3 + $0x60] sm:$0xff]  ;;  %v90_v4 = vld [vmem:[#allocation3 + $0x70] sm:$0xff]  ;;  %s190_s23 = smov 6   ;;  %vm129_vm2 = vcmask 179248  }
  0x24   :  { %49 = vst.msk [vmem:[%s282_s3] sm:$0xff] %vm48_vm1, %v229_v0  ;;  %50 = vst.msk [vmem:[%s282_s3 + $0x8] sm:$0xff] %vm48_vm1, %v229_v0  ;;  %v58_v5 = vld [vmem:[#allocation3] sm:$0xff]  ;;  %v68_v6 = vld [vmem:[#allocation3 + $0x10] sm:$0xff] }
  0x25   :  { %51 = vst.msk [vmem:[%s282_s3 + $0x10] sm:$0xff] %vm48_vm1, %v229_v0  ;;  %56 = vst.msk [vmem:[%s282_s3 + $0x30] sm:$0xff] %vm48_vm1, %v229_v0  ;;  %v78_v9 = vld [vmem:[#allocation3 + $0x20] sm:$0xff]  ;;  %v88_v10 = vld [vmem:[#allocation3 + $0x30] sm:$0xff] }
  0x26   :  { %v61_v11 = vld [vmem:[#allocation3 + $0x48] sm:$0xff]  ;;  %v71_v16 = vld [vmem:[#allocation3 + $0x58] sm:$0xff] }
  0x27   :  { %v62_v7 = vstv %s43_s30  ;;  %v72_v8 = vstv %s140_s4  ;;  %v81_v17 = vld [vmem:[#allocation3 + $0x68] sm:$0xff]  ;;  %v91_v22 = vld [vmem:[#allocation3 + $0x78] sm:$0xff] }
  0x28   :  { %v65_v12 = vmul.f32 %v62_v7, %v60_v1  ;;  %v75_v13 = vmul.f32 %v72_v8, %v70_v2  ;;  %v82_v14 = vstv %s141_s0  ;;  %v92_v15 = vstv %s142_s7  ;;  %v59_v23 = vld [vmem:[#allocation3 + $0x8] sm:$0xff]  ;;  %v69_v24 = vld [vmem:[#allocation3 + $0x18] sm:$0xff] }
  0x29   :  { %v85_v18 = vmul.f32 %v82_v14, %v80_v3  ;;  %v95_v19 = vmul.f32 %v92_v15, %v90_v4  ;;  %v63_v20 = vmul.f32 %v62_v7, %v58_v5  ;;  %v73_v21 = vmul.f32 %v72_v8, %v68_v6  ;;  %v79_v29 = vld [vmem:[#allocation3 + $0x28] sm:$0xff]  ;;  %v89_v30 = vld [vmem:[#allocation3 + $0x38] sm:$0xff] }
  0x2a   :  { %v99_v25 = vadd.f32 %v75_v13, %v65_v12  ;;  %v83_v26 = vmul.f32 %v82_v14, %v78_v9  ;;  %v93_v27 = vmul.f32 %v92_v15, %v88_v10  ;;  %v66_v28 = vmul.f32 %v62_v7, %v61_v11 }
  0x2b   :  { %v103_v31 = vadd.f32 %v95_v19, %v85_v18  ;;  %v97_v32 = vadd.f32 %v73_v21, %v63_v20  ;;  %v76_v33 = vmul.f32 %v72_v8, %v71_v16  ;;  %v86_v34 = vmul.f32 %v82_v14, %v81_v17 }
  0x2c   :  { %v101_v35 = vadd.f32 %v93_v27, %v83_v26  ;;  %v96_v36 = vmul.f32 %v92_v15, %v91_v22  ;;  %v64_v37 = vmul.f32 %v62_v7, %v59_v23  ;;  %v74_v38 = vmul.f32 %v72_v8, %v69_v24 }
  0x2d   :  { %v107_v39 = vadd.f32 %v103_v31, %v99_v25  ;;  %v100_v40 = vadd.f32 %v76_v33, %v66_v28  ;;  %v84_v41 = vmul.f32 %v82_v14, %v79_v29  ;;  %v94_v42 = vmul.f32 %v92_v15, %v89_v30 }
  0x2e   :  { %v105_v43 = vadd.f32 %v101_v35, %v97_v32  ;;  %v104_v44 = vadd.f32 %v96_v36, %v86_v34  ;;  %v98_v45 = vadd.f32 %v74_v38, %v64_v37 }
  0x2f   :  { %v111_v46 = vadd.f32 %v107_v39, %v229_v0  ;;  %v102_v47 = vadd.f32 %v94_v42, %v84_v41 }
  0x30   :  { %v109_v48 = vadd.f32 %v105_v43, %v229_v0  ;;  %v108_v49 = vadd.f32 %v104_v44, %v100_v40 }
  0x31   :  { %121 = vrot.lane.b32.xlu1 %v111_v46, %s190_s23  ;;  %v106_v50 = vadd.f32 %v102_v47, %v98_v45 }
  0x32   :  { %117 = vrot.lane.b32.xlu0 %v109_v48, %s190_s23  ;;  %v112_v51 = vadd.f32 %v108_v49, %v229_v0 }
  0x33   :  { %v110_v52 = vadd.f32 %v106_v50, %v229_v0 }
  0x35   :  { %123 = vrot.lane.b32.xlu1 %v112_v51, %s190_s23 }
  0x36   :  { %119 = vrot.lane.b32.xlu0 %v110_v52, %s190_s23 }
  0xa3   :  { %v122_v53 = vpop.permute.xlu1 %121 }
  0xa4   :  { %132 = vst.msk [vmem:[%s282_s3 + $0x26] sm:$0xff] %vm129_vm2, %v122_v53  ;;  %v118_v54 = vpop.permute.xlu0 %117 }
  0xa5   :  { %130 = vst.msk [vmem:[%s282_s3 + $0x6] sm:$0xff] %vm129_vm2, %v118_v54 }
  0xa7   :  { %v124_v55 = vpop.permute.xlu1 %123 }
  0xa8   :  { %133 = vst.msk [vmem:[%s282_s3 + $0x2e] sm:$0xff] %vm129_vm2, %v124_v55  ;;  %v120_v56 = vpop.permute.xlu0 %119 }
  0xa9   :  { %131 = vst.msk [vmem:[%s282_s3 + $0xe] sm:$0xff] %vm129_vm2, %v120_v56 }
  0xaa   :  { %138 = vsyncpa [#allocation4], 1 }
  0xab   :  { %139 = vsyncpa [#allocation5], 1 }

</bundles_post_ra>
